<compile_context>
chip_gen: v5e
topology: v5e:2x2
jax: 0.10.0
libtpu: 0.0.40
codegen_flags: <defaults>
</compile_context>

<pallas_src>
import functools

import jax
import jax.numpy as jnp
from jax.experimental import pallas as pl
from jax.experimental.pallas import tpu as pltpu


# Optional: set to jnp.bfloat16 to feed the MXU bf16 inputs (f32 accumulation
# is kept).  ~2x MXU throughput / HBM bandwidth, but it rounds the matmul
# inputs, so it is left off by default to preserve the nn.Linear f32 numerics.
MATMUL_INPUT_DTYPE = None


def _round_up(x: int, m: int) -> int:
    return ((x + m - 1) // m) * m


@functools.lru_cache(maxsize=None)
def _vmem_budget_bytes() -> int:
    """Generation-aware VMEM limit (conservative fallback if query fails)."""
    cap = 64 * 1024 * 1024
    try:
        info = pltpu.get_tpu_info()
        cap = int(getattr(info, "vmem_capacity_bytes", cap))
    except Exception:
        pass
    if cap >= 96 * 1024 * 1024:
        return 96 * 1024 * 1024       # v5e / v6e: 128 MiB physical VMEM
    return 48 * 1024 * 1024           # v7x: 64 MiB physical VMEM per TC


def _pick_tiles(B, in_dim, out_dim, vmem_budget, in_itemsize, out_itemsize):
    """Lane-dense tiles sized against the VMEM budget."""
    # M (batch): full dim for small B (GEMV regime, no padding), 128-multiples
    # once B is large enough to fill MXU passes.
    if B <= 256:
        tm = B
    elif B >= 512:
        tm = 512
    else:
        tm = 256
    # N (out_dim) and K (in_dim): full dim when small (no pad), else big
    # 128-aligned tiles to maximize weight reuse per HBM byte.
    tn = out_dim if out_dim <= 512 else 512
    tk = in_dim if in_dim <= 2048 else 2048

    def working_set(tm_, tn_, tk_):
        # double-buffered streamed inputs + resident f32 output/accumulator.
        return (2 * in_itemsize * (tm_ * tk_ + tk_ * tn_)      # cur, W tiles
                + 2 * in_itemsize * (tm_ * tn_ + tn_)          # residual, bias
                + max(out_itemsize, 4) * tm_ * tn_)            # resident out/acc

    budget = int(vmem_budget * 0.75)
    while working_set(tm, tn, tk) > budget:
        if tk > 512 and tk % 256 == 0:
            tk //= 2
        elif tn > 256 and tn % 256 == 0:
            tn //= 2
        elif tm >= 256 and tm % 256 == 0:
            tm //= 2
        else:
            break
    return tm, tn, tk


def _kernel_f32(cur_ref, w_ref, b_ref, nxt_ref, out_ref):
    """f32 output: the resident output tile doubles as the accumulator."""
    k = pl.program_id(2)

    @pl.when(k == 0)
    def _init():
        out_ref[...] = jnp.zeros_like(out_ref)

    out_ref[...] += jnp.dot(cur_ref[...], w_ref[...],
                            preferred_element_type=jnp.float32)

    @pl.when(k == pl.num_programs(2) - 1)
    def _epilogue():
        res = out_ref[...] + b_ref[...].astype(jnp.float32) \
              + nxt_ref[...].astype(jnp.float32)
        out_ref[...] = jnp.maximum(res, 0.0)


def _kernel_acc(cur_ref, w_ref, b_ref, nxt_ref, out_ref, acc_ref):
    """Non-f32 output: explicit f32 VMEM accumulator."""
    k = pl.program_id(2)

    @pl.when(k == 0)
    def _init():
        acc_ref[...] = jnp.zeros_like(acc_ref)

    acc_ref[...] += jnp.dot(cur_ref[...], w_ref[...],
                            preferred_element_type=jnp.float32)

    @pl.when(k == pl.num_programs(2) - 1)
    def _epilogue():
        res = acc_ref[...] + b_ref[...].astype(jnp.float32) \
              + nxt_ref[...].astype(jnp.float32)
        out_ref[...] = jnp.maximum(res, 0.0).astype(out_ref.dtype)


@jax.jit
def custom_add_layer(cur, weight, bias, nxt):
    """cur: (B, in_dim), weight: (out_dim, in_dim) [nn.Linear layout],
    bias: (out_dim,), nxt: (B, out_dim)."""
    B, in_dim = cur.shape
    out_dim, in_dim_w = weight.shape
    assert in_dim == in_dim_w
    assert nxt.shape == (B, out_dim)
    assert bias.shape == (out_dim,)

    out_dtype = cur.dtype
    mm_dtype = MATMUL_INPUT_DTYPE or cur.dtype
    in_itemsize = jnp.dtype(mm_dtype).itemsize
    out_itemsize = jnp.dtype(out_dtype).itemsize

    budget = _vmem_budget_bytes()
    tm, tn, tk = _pick_tiles(B, in_dim, out_dim, budget, in_itemsize, out_itemsize)

    m_pad = _round_up(B, tm)
    n_pad = _round_up(out_dim, tn)
    k_pad = _round_up(in_dim, tk)

    # Megacore (v7x): if the (M, N) grid collapsed to a single block, split a
    # parallel axis so both TensorCores get work.
    if (m_pad // tm) * (n_pad // tn) == 1:
        if tn >= 256 and tn % 256 == 0:
            tn //= 2
            n_pad = _round_up(out_dim, tn)
        elif tm >= 256 and tm % 256 == 0:
            tm //= 2
            m_pad = _round_up(B, tm)

    # One-time wrapper transpose: canonical MXU RHS layout (in_dim, out_dim).
    w_t = weight.T

    def _maybe_pad(x, pads):
        return x if all(p == 0 for _, p in pads) else jnp.pad(x, pads)

    # Zero padding keeps matmul / bias / residual / ReLU exact on the valid
    # region; skipped entirely when dims already match their tiles.
    cur_p = _maybe_pad(cur, ((0, m_pad - B), (0, k_pad - in_dim)))
    w_p = _maybe_pad(w_t, ((0, k_pad - in_dim), (0, n_pad - out_dim)))
    nxt_p = _maybe_pad(nxt, ((0, m_pad - B), (0, n_pad - out_dim)))
    b_p = _maybe_pad(bias, ((0, n_pad - out_dim),)).reshape(1, n_pad)

    if MATMUL_INPUT_DTYPE is not None:
        cur_p = cur_p.astype(MATMUL_INPUT_DTYPE)
        w_p = w_p.astype(MATMUL_INPUT_DTYPE)

    gm, gn, gk = m_pad // tm, n_pad // tn, k_pad // tk
    grid = (gm, gn, gk)

    # Re-streaming-aware traffic estimate: cur is read once per N-tile, W once
    # per M-tile; residual/bias/output are read/written once.
    cost = pl.CostEstimate(
        flops=2 * m_pad * n_pad * k_pad,
        transcendentals=0,
        bytes_accessed=(in_itemsize * (cur_p.size * gn + w_p.size * gm)
                        + out_itemsize * (nxt_p.size + b_p.size + m_pad * n_pad)),
    )

    use_direct = out_dtype == jnp.float32
    kernel = _kernel_f32 if use_direct else _kernel_acc
    scratch = [] if use_direct else [pltpu.VMEM((tm, tn), jnp.float32)]

    out_padded = pl.pallas_call(
        kernel,
        out_shape=jax.ShapeDtypeStruct((m_pad, n_pad), out_dtype),
        grid_spec=pltpu.PrefetchScalarGridSpec(
            num_scalar_prefetch=0,
            grid=grid,
            in_specs=[
                pl.BlockSpec((tm, tk), lambda i, j, k: (i, k)),   # cur tile
                pl.BlockSpec((tk, tn), lambda i, j, k: (k, j)),   # W^T tile (canonical RHS)
                pl.BlockSpec((1, tn), lambda i, j, k: (0, j)),    # bias
                pl.BlockSpec((tm, tn), lambda i, j, k: (i, j)),   # residual (resident over k)
            ],
            out_specs=pl.BlockSpec((tm, tn), lambda i, j, k: (i, j)),
            scratch_shapes=scratch,
        ),
        compiler_params=pltpu.CompilerParams(
            # Batch / out_dim tiles are independent -> shard across v7x's 2 TCs.
            dimension_semantics=("parallel", "parallel", "arbitrary"),
            vmem_limit_bytes=budget,
        ),
        cost_estimate=cost,
    )(cur_p, w_p, b_p, nxt_p)

    if (m_pad, n_pad) != (B, out_dim):
        out_padded = out_padded[:B, :out_dim]
    return out_padded


if __name__ == "__main__":
    key = jax.random.PRNGKey(0)
    k_cur, k_nxt, k_w, k_b = jax.random.split(key, 4)

    B, in_dim, out_dim = 8, 32, 32

    cur = jax.random.normal(k_cur, (B, in_dim), dtype=jnp.float32)
    nxt = jax.random.normal(k_nxt, (B, out_dim), dtype=jnp.float32)

    # Deterministic parameter init mimicking nn.Linear (uniform in +-1/sqrt(in_dim)).
    bound = 1.0 / jnp.sqrt(jnp.float32(in_dim))
    weight = jax.random.uniform(k_w, (out_dim, in_dim), jnp.float32, -bound, bound)
    bias = jax.random.uniform(k_b, (out_dim,), jnp.float32, -bound, bound)

    out = custom_add_layer(cur, weight, bias, nxt)
    out = jax.block_until_ready(out)

    # Pure-JAX reference check.
    ref = jnp.maximum(cur @ weight.T + bias + nxt, 0.0)
    assert out.shape == ref.shape, "shape mismatch vs reference"
    assert jnp.allclose(out, ref, atol=1e-5, rtol=1e-5), "mismatch vs reference"

    print("KERNEL_OK")
</pallas_src>

<mosaic_0001>
module attributes {stable_mosaic.version = 11 : i64} {
  func.func @_kernel_f32(%arg0: i32, %arg1: i32, %arg2: i32, %arg3: memref<8x32xf32, #tpu.memory_space<vmem>>, %arg4: memref<32x32xf32, #tpu.memory_space<vmem>>, %arg5: memref<1x32xf32, #tpu.memory_space<vmem>>, %arg6: memref<8x32xf32, #tpu.memory_space<vmem>>, %arg7: memref<8x32xf32, #tpu.memory_space<vmem>>) attributes {dimension_semantics = [#tpu.dimension_semantics<parallel>, #tpu.dimension_semantics<parallel>, #tpu.dimension_semantics<arbitrary>], iteration_bounds = array<i64: 1, 1, 1>, scalar_prefetch = 0 : i64, scratch_operands = 0 : i64, tpu.core_type = #tpu.core_type<tc>, window_params = [{transform_indices = @transform_0, window_bounds = array<i64: 8, 32>}, {transform_indices = @transform_1, window_bounds = array<i64: 32, 32>}, {transform_indices = @transform_2, window_bounds = array<i64: 1, 32>}, {transform_indices = @transform_3, window_bounds = array<i64: 8, 32>}, {transform_indices = @transform_4, window_bounds = array<i64: 8, 32>}]} {
    %c0_i32 = arith.constant 0 : i32
    %0 = arith.cmpi eq, %arg2, %c0_i32 : i32
    %1 = arith.extui %0 : i1 to i32
    %c0_i32_0 = arith.constant 0 : i32
    %2 = arith.cmpi ne, %1, %c0_i32_0 : i32
    scf.if %2 {
      %cst_10 = arith.constant 0.000000e+00 : f32
      %12 = vector.broadcast %cst_10 : f32 to vector<8x32xf32>
      %c0_11 = arith.constant 0 : index
      %c0_12 = arith.constant 0 : index
      %13 = vector.load %arg7[%c0_11, %c0_12] : memref<8x32xf32, #tpu.memory_space<vmem>>, vector<8x32xf32>
      tpu.vector_store %arg7[%c0_11, %c0_12], %12 {strides = array<i32>} : memref<8x32xf32, #tpu.memory_space<vmem>>, vector<8x32xf32>,
    } else {
    }
    %c0 = arith.constant 0 : index
    %c0_1 = arith.constant 0 : index
    %3 = vector.load %arg7[%c0, %c0_1] : memref<8x32xf32, #tpu.memory_space<vmem>>, vector<8x32xf32>
    %c0_2 = arith.constant 0 : index
    %c0_3 = arith.constant 0 : index
    %4 = vector.load %arg3[%c0_2, %c0_3] : memref<8x32xf32, #tpu.memory_space<vmem>>, vector<8x32xf32>
    %c0_4 = arith.constant 0 : index
    %c0_5 = arith.constant 0 : index
    %5 = vector.load %arg4[%c0_4, %c0_5] : memref<32x32xf32, #tpu.memory_space<vmem>>, vector<32x32xf32>
    %cst = arith.constant dense<0.000000e+00> : vector<8x32xf32>
    %6 = tpu.matmul %4, %5, %cst {dimension_numbers = #tpu.dot_dimension_numbers<[1], [0], [0], [1], [0, 0, 1, 1], [], []>} : vector<8x32xf32>, vector<32x32xf32>, vector<8x32xf32> -> vector<8x32xf32>
    %7 = arith.addf %3, %6 : vector<8x32xf32>
    %c0_6 = arith.constant 0 : index
    %c0_7 = arith.constant 0 : index
    %8 = vector.load %arg7[%c0_6, %c0_7] : memref<8x32xf32, #tpu.memory_space<vmem>>, vector<8x32xf32>
    tpu.vector_store %arg7[%c0_6, %c0_7], %7 {strides = array<i32>} : memref<8x32xf32, #tpu.memory_space<vmem>>, vector<8x32xf32>,
    %c0_i32_8 = arith.constant 0 : i32
    %9 = arith.cmpi eq, %arg2, %c0_i32_8 : i32
    %10 = arith.extui %9 : i1 to i32
    %c0_i32_9 = arith.constant 0 : i32
    %11 = arith.cmpi ne, %10, %c0_i32_9 : i32
    scf.if %11 {
      %c0_10 = arith.constant 0 : index
      %c0_11 = arith.constant 0 : index
      %12 = vector.load %arg7[%c0_10, %c0_11] : memref<8x32xf32, #tpu.memory_space<vmem>>, vector<8x32xf32>
      %c0_12 = arith.constant 0 : index
      %c0_13 = arith.constant 0 : index
      %13 = vector.load %arg5[%c0_12, %c0_13] : memref<1x32xf32, #tpu.memory_space<vmem>>, vector<1x32xf32>
      %14 = vector.broadcast %13 : vector<1x32xf32> to vector<8x32xf32>
      %15 = arith.addf %12, %14 : vector<8x32xf32>
      %c0_14 = arith.constant 0 : index
      %c0_15 = arith.constant 0 : index
      %16 = vector.load %arg6[%c0_14, %c0_15] : memref<8x32xf32, #tpu.memory_space<vmem>>, vector<8x32xf32>
      %17 = arith.addf %15, %16 : vector<8x32xf32>
      %cst_16 = arith.constant 0.000000e+00 : f32
      %18 = vector.broadcast %cst_16 : f32 to vector<8x32xf32>
      %19 = arith.maximumf %17, %18 : vector<8x32xf32>
      %c0_17 = arith.constant 0 : index
      %c0_18 = arith.constant 0 : index
      %20 = vector.load %arg7[%c0_17, %c0_18] : memref<8x32xf32, #tpu.memory_space<vmem>>, vector<8x32xf32>
      tpu.vector_store %arg7[%c0_17, %c0_18], %19 {strides = array<i32>} : memref<8x32xf32, #tpu.memory_space<vmem>>, vector<8x32xf32>,
    } else {
    }
    return
  }
  func.func @transform_0(%arg0: i32, %arg1: i32, %arg2: i32) -> (i32, i32) {
    %c0_i32 = arith.constant 0 : i32
    return %arg0, %arg2 : i32, i32
  }
  func.func @transform_1(%arg0: i32, %arg1: i32, %arg2: i32) -> (i32, i32) {
    %c0_i32 = arith.constant 0 : i32
    return %arg2, %arg1 : i32, i32
  }
  func.func @transform_2(%arg0: i32, %arg1: i32, %arg2: i32) -> (i32, i32) {
    %c0_i32 = arith.constant 0 : i32
    %c0_i32_0 = arith.constant 0 : i32
    return %c0_i32, %arg1 : i32, i32
  }
  func.func @transform_3(%arg0: i32, %arg1: i32, %arg2: i32) -> (i32, i32) {
    %c0_i32 = arith.constant 0 : i32
    return %arg0, %arg1 : i32, i32
  }
  func.func @transform_4(%arg0: i32, %arg1: i32, %arg2: i32) -> (i32, i32) {
    %c0_i32 = arith.constant 0 : i32
    return %arg0, %arg1 : i32, i32
  }
}

</mosaic_0001>

<bundles_post_ra>
// kernel: custom_add_layer.1
= control target key start
LH: loop header
LB: loop body
LE: loop exit
PB: predicated region body
PF: predicated region fallthrough
CT: control target
= control target key end

     0   :  { %vm22_vm0 = vcmask 261120   ;;  %v115_v2 = vmov 0.0   ;;  %s170_s0 = inlined_call_operand.vmem [shape: f32[8,32], index: 0, kind: input, shape index: {}]   ;;  %s171_s1 = inlined_call_operand.vmem [shape: f32[32,32], index: 1, kind: input, shape index: {}]   ;;  %s172_s2 = inlined_call_operand.vmem [shape: f32[1,32], index: 2, kind: input, shape index: {}]   ;;  %s173_s3 = inlined_call_operand.vmem [shape: f32[8,32], index: 3, kind: input, shape index: {}]   ;;  %s174_s4 = inlined_call_operand.hbm [shape: f32[8,32], index: 4, kind: output, shape index: {}]  }
   0x1   :  { %v29_v0 = vld [vmem:[%s171_s1 + $0x18] sm:$0xff]  ;;  %v28_v1 = vld [vmem:[%s171_s1 + $0x10] sm:$0xff]  ;;  %23 = vst.msk [vmem:[#allocation2] sm:$0xff] %vm22_vm0, %v115_v2 }
   0x2   :  { %46 = vmatpush.msra.mxu0 %v29_v0 }
   0x3   :  { %9 = vsyncpa [#allocation3], 0  ;;  %v27_v3 = vld [vmem:[%s171_s1 + $0x8] sm:$0xff]  ;;  %v26_v4 = vld [vmem:[%s171_s1] sm:$0xff]  ;;  %s116_s28 = smov [#allocation2]   ;;  %s76_s5 = sshll.u32 %s174_s4, 4  ;;  %s77_s5 = int_to_ptr.hbm [resolvable:$true] %s76_s5 }
   0x4   :  { %47 = vmatpush.msra.mxu0 %v28_v1  ;;  %v25_v5 = vld [vmem:[%s170_s0] sm:$0xff]  ;;  %s74_s0 = sshll.u32 %s116_s28, 4  ;;  %s75_s0 = int_to_ptr.vmem [resolvable:$true] %s74_s0 }
   0x5   :  { %v88_v9 = vld [vmem:[%s172_s2] ss:$0 sm:$0xff] }
   0x6   :  { %48 = vmatpush.msra.mxu0 %v27_v3  ;;  %v65_v11 = vld [vmem:[%s173_s3] sm:$0xff] }
   0x8   :  { %49 = vmatpush.msra.mxu0 %v26_v4  ;;  %v24_v6 = vld [vmem:[#allocation2] sm:$0xff] }
   0x9   :  { %85 = vmatmul.msk.f32.vlgmr.msra.gmra.mxu0 %vm22_vm0, %v25_v5 }
  0x86   :  { %v51_v7 = vpop.f32.mrf.mxu0 }
  0x87   :  { %v54_v8 = vadd.f32 %v51_v7, %v24_v6 }
  0x89   :  { %55 = vst.msk [vmem:[#allocation2] sm:$0xff] %vm22_vm0, %v54_v8 }
  0x90   :  { %v59_v10 = vld [vmem:[#allocation2] sm:$0xff] }
  0x91   :  { %v64_v12 = vadd.f32 %v88_v9, %v59_v10 }
  0x93   :  { %v66_v13 = vadd.f32 %v65_v11, %v64_v12 }
  0x95   :  { %v67_v14 = vmax.f32 %v66_v13, 0.0 }
  0x97   :  { %68 = vst.msk [vmem:[#allocation2] sm:$0xff] %vm22_vm0, %v67_v14 }
  0x98   :  { %79 = dma.vmem_to_hbm [thread:$0]  %s75_s0, 128, %s77_s5, [#allocation3]  }
  0x99   :  { %113 = dma.done.wait [#allocation3], 128  }
  0x9a   :  { %114 = vsyncadd [#allocation3], 4294967168 }
  0x9b   :  { %84 = vsyncpa [#allocation3], 1 }

</bundles_post_ra>
